<compile_context>
chip_gen: v6e
topology: v6e:2x2x1
jax: 0.10.0
libtpu: 0.0.40
codegen_flags: <defaults>
</compile_context>

<pallas_src>
import math

import jax
import jax.numpy as jnp
from jax.experimental import pallas as pl
from jax.experimental.pallas import tpu as pltpu

LANE = 128
BF16_PACK = 16          # bf16 packs 16 rows per (sublane-pair) vreg tile
NEG_BIG = -1e30         # "minus infinity" bias for padded action logits


def _round_up(x, m):
    return ((x + m - 1) // m) * m


def _cdiv(a, b):
    return -(-a // b)


def actor_kernel(x_ref, w1_ref, b1_ref, w2_ref, b2_ref,
                 w3_ref, b3_ref, w4_ref, b4_ref, out_ref):
    """Fused 4-layer MLP + softmax on one batch tile.

    bf16 operands on the MXU with f32 accumulation; bias-add / ReLU epilogue
    in f32 (v5e VPU has no bf16 path) but the stored inter-layer activation is
    immediately cast to bf16 so the live/spilled tensor is half-size.
    """
    def layer(h_bf16, w_ref, b_ref):
        acc = jnp.dot(h_bf16, w_ref[...], preferred_element_type=jnp.float32)
        return jnp.maximum(acc + b_ref[...], 0.0).astype(jnp.bfloat16)

    h = layer(x_ref[...], w1_ref, b1_ref)
    h = layer(h, w2_ref, b2_ref)
    h = layer(h, w3_ref, b3_ref)

    # Final layer + softmax. Padded action columns carry bias == NEG_BIG, so
    # exp underflows to exactly 0 and they get no probability mass. Logits and
    # the softmax stay in f32.
    logits = jnp.dot(h, w4_ref[...],
                     preferred_element_type=jnp.float32) + b4_ref[...]
    m = jnp.max(logits, axis=-1, keepdims=True)
    e = jnp.exp(logits - m)
    denom = jnp.sum(e, axis=-1, keepdims=True)
    # Exact divide (not approx reciprocal): the output is a probability
    # distribution that may be sampled from; the cost on a (tb,128) tile is
    # negligible.
    out_ref[...] = (e / denom).astype(out_ref.dtype)


def _pick_tiling(B, *, tb_max=512):
    """Pick (tile_rows, padded_rows).

    * padded_rows is the smallest multiple of 16 (bf16 row pack) >= B, then
      rounded up so it splits evenly into `tile_rows`-row tiles.
    * at least 2 grid steps whenever the batch is big enough, so the
      "parallel" batch axis actually shards across v7x's two TensorCores.
    * tile_rows capped at tb_max (multiple of 16) to bound per-step VMEM /
      vreg pressure while amortizing the ~0.35us per-grid-step overhead.
    """
    b_pad = _round_up(B, BF16_PACK)
    if b_pad < 2 * BF16_PACK:
        return b_pad, b_pad                       # tiny batch: single tile
    n_tiles = max(2, _cdiv(b_pad, tb_max))
    tb = _round_up(_cdiv(b_pad, n_tiles), BF16_PACK)
    return tb, tb * n_tiles


def actor_forward(state, params, num_actions, *, tb_max=512):
    """Batch-tiled pallas_call; weights stay VMEM-resident across grid steps."""
    (w1, b1), (w2, b2), (w3, b3), (w4, b4) = params
    B, state_dim = state.shape
    s_pad = w1.shape[0]     # padded state_dim (multiple of 16, NOT 128)
    a_pad = w4.shape[1]     # padded num_actions (128)

    tb, b_pad = _pick_tiling(B, tb_max=tb_max)

    # Pad batch rows + state features once, already in bf16 (halves x DMA and
    # drops the in-kernel f32->bf16 cast; x feeds the MXU in bf16 anyway).
    x = jnp.zeros((b_pad, s_pad), jnp.bfloat16)
    x = x.at[:B, :state_dim].set(state.astype(jnp.bfloat16))

    batch_map = lambda i: (i, 0)
    const_map = lambda i: (0, 0)   # constant block index -> fetched once, resident

    out = pl.pallas_call(
        actor_kernel,
        out_shape=jax.ShapeDtypeStruct((b_pad, a_pad), jnp.float32),
        grid=(b_pad // tb,),
        in_specs=[
            pl.BlockSpec((tb, s_pad), batch_map),
            pl.BlockSpec(w1.shape, const_map),
            pl.BlockSpec(b1.shape, const_map),
            pl.BlockSpec(w2.shape, const_map),
            pl.BlockSpec(b2.shape, const_map),
            pl.BlockSpec(w3.shape, const_map),
            pl.BlockSpec(b3.shape, const_map),
            pl.BlockSpec(w4.shape, const_map),
            pl.BlockSpec(b4.shape, const_map),
        ],
        out_specs=pl.BlockSpec((tb, a_pad), batch_map),
        compiler_params=pltpu.CompilerParams(
            dimension_semantics=("parallel",)),
    )(x, w1, b1, w2, b2, w3, b3, w4, b4)

    # Strip batch and action padding.
    return out[:B, :num_actions]


def _pad2(a, shape):
    out = jnp.zeros(shape, a.dtype)
    return out.at[:a.shape[0], :a.shape[1]].set(a)


def init_linear(key, in_dim, out_dim, in_pad, out_pad, *, last=False):
    """PyTorch-style init U(-1/sqrt(in), 1/sqrt(in)), padded to aligned shapes.

    Weight is (in_pad, out_pad) bf16 (y = x @ W + b on the MXU); bias is
    (1, out_pad) f32. Padded rows/cols are zero, except the last layer's
    padded bias columns which are NEG_BIG so softmax ignores them.
    """
    kw, kb = jax.random.split(key)
    bound = 1.0 / math.sqrt(in_dim)
    w = jax.random.uniform(kw, (in_dim, out_dim), jnp.float32, -bound, bound)
    b = jax.random.uniform(kb, (1, out_dim), jnp.float32, -bound, bound)

    w_p = _pad2(w, (in_pad, out_pad)).astype(jnp.bfloat16)
    if last:
        b_p = jnp.full((1, out_pad), NEG_BIG, jnp.float32)
        b_p = b_p.at[:, :out_dim].set(b)
    else:
        b_p = _pad2(b, (1, out_pad))
    return w_p, b_p


def make_actor_params(key, state_dim, num_actions):
    k1, k2, k3, k4 = jax.random.split(key, 4)
    # Layer-1 K dim only needs bf16 row-pack alignment (16), not lane (128):
    # w1 is 16x512 bf16 instead of 128x512.
    s_p = _round_up(state_dim, BF16_PACK)    # e.g. 16  -> 16
    h1_p = _round_up(400, LANE)              # 400 -> 512
    h2_p = _round_up(100, LANE)              # 100 -> 128
    h3_p = _round_up(100, LANE)              # 100 -> 128
    a_p = _round_up(num_actions, LANE)       # 8   -> 128
    return (
        init_linear(k1, state_dim, 400, s_p, h1_p),
        init_linear(k2, 400, 100, h1_p, h2_p),
        init_linear(k3, 100, 100, h2_p, h3_p),
        init_linear(k4, 100, num_actions, h3_p, a_p, last=True),
    )


if __name__ == "__main__":
    key = jax.random.PRNGKey(0)
    k_params, k_state = jax.random.split(key)

    batch = 2
    state_dim = 16
    num_actions = 8

    params = make_actor_params(k_params, state_dim, num_actions)
    state = jax.random.normal(k_state, (batch, state_dim), jnp.float32)

    out = actor_forward(state, params, num_actions)
    out = jax.block_until_ready(out)

    # sanity: softmax rows sum to ~1 (exact divide => tight tolerance)
    row_sums = jnp.sum(out, axis=1)
    assert out.shape == (batch, num_actions)
    assert bool(jnp.all(jnp.abs(row_sums - 1.0) < 1e-3))
    assert bool(jnp.all(out >= 0.0))

    print("KERNEL_OK")
</pallas_src>

<mosaic_0001>
module attributes {stable_mosaic.version = 11 : i64} {
  func.func @actor_kernel(%arg0: i32, %arg1: memref<16x16xbf16, #tpu.memory_space<vmem>>, %arg2: memref<16x512xbf16, #tpu.memory_space<vmem>>, %arg3: memref<1x512xf32, #tpu.memory_space<vmem>>, %arg4: memref<512x128xbf16, #tpu.memory_space<vmem>>, %arg5: memref<1x128xf32, #tpu.memory_space<vmem>>, %arg6: memref<128x128xbf16, #tpu.memory_space<vmem>>, %arg7: memref<1x128xf32, #tpu.memory_space<vmem>>, %arg8: memref<128x128xbf16, #tpu.memory_space<vmem>>, %arg9: memref<1x128xf32, #tpu.memory_space<vmem>>, %arg10: memref<16x128xf32, #tpu.memory_space<vmem>>) attributes {dimension_semantics = [#tpu.dimension_semantics<parallel>], iteration_bounds = array<i64: 1>, scalar_prefetch = 0 : i64, scratch_operands = 0 : i64, tpu.core_type = #tpu.core_type<tc>, window_params = [{transform_indices = @transform_0, window_bounds = array<i64: 16, 16>}, {pipeline_mode = #tpu.pipeline_mode<synchronous>, transform_indices = @transform_1, window_bounds = array<i64: 16, 512>}, {pipeline_mode = #tpu.pipeline_mode<synchronous>, transform_indices = @transform_2, window_bounds = array<i64: 1, 512>}, {pipeline_mode = #tpu.pipeline_mode<synchronous>, transform_indices = @transform_3, window_bounds = array<i64: 512, 128>}, {pipeline_mode = #tpu.pipeline_mode<synchronous>, transform_indices = @transform_4, window_bounds = array<i64: 1, 128>}, {pipeline_mode = #tpu.pipeline_mode<synchronous>, transform_indices = @transform_5, window_bounds = array<i64: 128, 128>}, {pipeline_mode = #tpu.pipeline_mode<synchronous>, transform_indices = @transform_6, window_bounds = array<i64: 1, 128>}, {pipeline_mode = #tpu.pipeline_mode<synchronous>, transform_indices = @transform_7, window_bounds = array<i64: 128, 128>}, {pipeline_mode = #tpu.pipeline_mode<synchronous>, transform_indices = @transform_8, window_bounds = array<i64: 1, 128>}, {transform_indices = @transform_9, window_bounds = array<i64: 16, 128>}]} {
    %c0 = arith.constant 0 : index
    %c0_0 = arith.constant 0 : index
    %0 = vector.load %arg1[%c0, %c0_0] : memref<16x16xbf16, #tpu.memory_space<vmem>>, vector<16x16xbf16>
    %c0_1 = arith.constant 0 : index
    %c0_2 = arith.constant 0 : index
    %1 = vector.load %arg2[%c0_1, %c0_2] : memref<16x512xbf16, #tpu.memory_space<vmem>>, vector<16x512xbf16>
    %cst = arith.constant dense<0.000000e+00> : vector<16x512xf32>
    %2 = tpu.matmul %0, %1, %cst {dimension_numbers = #tpu.dot_dimension_numbers<[1], [0], [0], [1], [0, 0, 1, 1], [], []>} : vector<16x16xbf16>, vector<16x512xbf16>, vector<16x512xf32> -> vector<16x512xf32>
    %c0_3 = arith.constant 0 : index
    %c0_4 = arith.constant 0 : index
    %3 = vector.load %arg3[%c0_3, %c0_4] : memref<1x512xf32, #tpu.memory_space<vmem>>, vector<1x512xf32>
    %4 = vector.broadcast %3 : vector<1x512xf32> to vector<16x512xf32>
    %5 = arith.addf %2, %4 : vector<16x512xf32>
    %cst_5 = arith.constant 0.000000e+00 : f32
    %6 = vector.broadcast %cst_5 : f32 to vector<16x512xf32>
    %7 = arith.maximumf %5, %6 : vector<16x512xf32>
    %8 = arith.truncf %7 : vector<16x512xf32> to vector<16x512xbf16>
    %c0_6 = arith.constant 0 : index
    %c0_7 = arith.constant 0 : index
    %9 = vector.load %arg4[%c0_6, %c0_7] : memref<512x128xbf16, #tpu.memory_space<vmem>>, vector<512x128xbf16>
    %cst_8 = arith.constant dense<0.000000e+00> : vector<16x128xf32>
    %10 = tpu.matmul %8, %9, %cst_8 {dimension_numbers = #tpu.dot_dimension_numbers<[1], [0], [0], [1], [0, 0, 1, 1], [], []>} : vector<16x512xbf16>, vector<512x128xbf16>, vector<16x128xf32> -> vector<16x128xf32>
    %c0_9 = arith.constant 0 : index
    %c0_10 = arith.constant 0 : index
    %11 = vector.load %arg5[%c0_9, %c0_10] : memref<1x128xf32, #tpu.memory_space<vmem>>, vector<1x128xf32>
    %12 = vector.broadcast %11 : vector<1x128xf32> to vector<16x128xf32>
    %13 = arith.addf %10, %12 : vector<16x128xf32>
    %cst_11 = arith.constant 0.000000e+00 : f32
    %14 = vector.broadcast %cst_11 : f32 to vector<16x128xf32>
    %15 = arith.maximumf %13, %14 : vector<16x128xf32>
    %16 = arith.truncf %15 : vector<16x128xf32> to vector<16x128xbf16>
    %c0_12 = arith.constant 0 : index
    %c0_13 = arith.constant 0 : index
    %17 = vector.load %arg6[%c0_12, %c0_13] : memref<128x128xbf16, #tpu.memory_space<vmem>>, vector<128x128xbf16>
    %cst_14 = arith.constant dense<0.000000e+00> : vector<16x128xf32>
    %18 = tpu.matmul %16, %17, %cst_14 {dimension_numbers = #tpu.dot_dimension_numbers<[1], [0], [0], [1], [0, 0, 1, 1], [], []>} : vector<16x128xbf16>, vector<128x128xbf16>, vector<16x128xf32> -> vector<16x128xf32>
    %c0_15 = arith.constant 0 : index
    %c0_16 = arith.constant 0 : index
    %19 = vector.load %arg7[%c0_15, %c0_16] : memref<1x128xf32, #tpu.memory_space<vmem>>, vector<1x128xf32>
    %20 = vector.broadcast %19 : vector<1x128xf32> to vector<16x128xf32>
    %21 = arith.addf %18, %20 : vector<16x128xf32>
    %cst_17 = arith.constant 0.000000e+00 : f32
    %22 = vector.broadcast %cst_17 : f32 to vector<16x128xf32>
    %23 = arith.maximumf %21, %22 : vector<16x128xf32>
    %24 = arith.truncf %23 : vector<16x128xf32> to vector<16x128xbf16>
    %c0_18 = arith.constant 0 : index
    %c0_19 = arith.constant 0 : index
    %25 = vector.load %arg8[%c0_18, %c0_19] : memref<128x128xbf16, #tpu.memory_space<vmem>>, vector<128x128xbf16>
    %cst_20 = arith.constant dense<0.000000e+00> : vector<16x128xf32>
    %26 = tpu.matmul %24, %25, %cst_20 {dimension_numbers = #tpu.dot_dimension_numbers<[1], [0], [0], [1], [0, 0, 1, 1], [], []>} : vector<16x128xbf16>, vector<128x128xbf16>, vector<16x128xf32> -> vector<16x128xf32>
    %c0_21 = arith.constant 0 : index
    %c0_22 = arith.constant 0 : index
    %27 = vector.load %arg9[%c0_21, %c0_22] : memref<1x128xf32, #tpu.memory_space<vmem>>, vector<1x128xf32>
    %28 = vector.broadcast %27 : vector<1x128xf32> to vector<16x128xf32>
    %29 = arith.addf %26, %28 : vector<16x128xf32>
    %cst_23 = arith.constant dense<0xFF800000> : vector<16xf32>
    %30 = vector.multi_reduction <maximumf>, %29, %cst_23 [1] : vector<16x128xf32> to vector<16xf32>
    %31 = vector.shape_cast %30 : vector<16xf32> to vector<16x1xf32>
    %32 = vector.broadcast %31 : vector<16x1xf32> to vector<16x128xf32>
    %33 = arith.subf %29, %32 : vector<16x128xf32>
    %34 = math.exp %33 : vector<16x128xf32>
    %cst_24 = arith.constant dense<0.000000e+00> : vector<16xf32>
    %35 = vector.multi_reduction <add>, %34, %cst_24 [1] : vector<16x128xf32> to vector<16xf32>
    %36 = vector.shape_cast %35 : vector<16xf32> to vector<16x1xf32>
    %37 = vector.broadcast %36 : vector<16x1xf32> to vector<16x128xf32>
    %38 = arith.divf %34, %37 : vector<16x128xf32>
    %c0_25 = arith.constant 0 : index
    %c0_26 = arith.constant 0 : index
    %39 = vector.load %arg10[%c0_25, %c0_26] : memref<16x128xf32, #tpu.memory_space<vmem>>, vector<16x128xf32>
    tpu.vector_store %arg10[%c0_25, %c0_26], %38 {strides = array<i32>} : memref<16x128xf32, #tpu.memory_space<vmem>>, vector<16x128xf32>,
    return
  }
  func.func @transform_0(%arg0: i32) -> (i32, i32) {
    %c0_i32 = arith.constant 0 : i32
    %c0_i32_0 = arith.constant 0 : i32
    return %arg0, %c0_i32 : i32, i32
  }
  func.func @transform_1(%arg0: i32) -> (i32, i32) {
    %c0_i32 = arith.constant 0 : i32
    %c0_i32_0 = arith.constant 0 : i32
    %c0_i32_1 = arith.constant 0 : i32
    return %c0_i32, %c0_i32_0 : i32, i32
  }
  func.func @transform_2(%arg0: i32) -> (i32, i32) {
    %c0_i32 = arith.constant 0 : i32
    %c0_i32_0 = arith.constant 0 : i32
    %c0_i32_1 = arith.constant 0 : i32
    return %c0_i32, %c0_i32_0 : i32, i32
  }
  func.func @transform_3(%arg0: i32) -> (i32, i32) {
    %c0_i32 = arith.constant 0 : i32
    %c0_i32_0 = arith.constant 0 : i32
    %c0_i32_1 = arith.constant 0 : i32
    return %c0_i32, %c0_i32_0 : i32, i32
  }
  func.func @transform_4(%arg0: i32) -> (i32, i32) {
    %c0_i32 = arith.constant 0 : i32
    %c0_i32_0 = arith.constant 0 : i32
    %c0_i32_1 = arith.constant 0 : i32
    return %c0_i32, %c0_i32_0 : i32, i32
  }
  func.func @transform_5(%arg0: i32) -> (i32, i32) {
    %c0_i32 = arith.constant 0 : i32
    %c0_i32_0 = arith.constant 0 : i32
    %c0_i32_1 = arith.constant 0 : i32
    return %c0_i32, %c0_i32_0 : i32, i32
  }
  func.func @transform_6(%arg0: i32) -> (i32, i32) {
    %c0_i32 = arith.constant 0 : i32
    %c0_i32_0 = arith.constant 0 : i32
    %c0_i32_1 = arith.constant 0 : i32
    return %c0_i32, %c0_i32_0 : i32, i32
  }
  func.func @transform_7(%arg0: i32) -> (i32, i32) {
    %c0_i32 = arith.constant 0 : i32
    %c0_i32_0 = arith.constant 0 : i32
    %c0_i32_1 = arith.constant 0 : i32
    return %c0_i32, %c0_i32_0 : i32, i32
  }
  func.func @transform_8(%arg0: i32) -> (i32, i32) {
    %c0_i32 = arith.constant 0 : i32
    %c0_i32_0 = arith.constant 0 : i32
    %c0_i32_1 = arith.constant 0 : i32
    return %c0_i32, %c0_i32_0 : i32, i32
  }
  func.func @transform_9(%arg0: i32) -> (i32, i32) {
    %c0_i32 = arith.constant 0 : i32
    %c0_i32_0 = arith.constant 0 : i32
    return %arg0, %c0_i32 : i32, i32
  }
}

</mosaic_0001>

<bundles_post_ra>
// kernel: tpu_custom_call.1
= control target key start
LH: loop header
LB: loop body
LE: loop exit
PB: predicated region body
PF: predicated region fallthrough
CT: control target
= control target key end

     0   :  { %14 = vsyncpa [#allocation3], 0  ;;  %s1399_s0 = inlined_call_operand.hbm [shape: bf16[16,16], index: 0, kind: input, shape index: {}]   ;;  %s1400_s1 = inlined_call_operand.hbm [shape: bf16[16,512], index: 1, kind: input, shape index: {}]   ;;  %s1401_s2 = inlined_call_operand.hbm [shape: f32[1,512], index: 2, kind: input, shape index: {}]   ;;  %s1402_s3 = inlined_call_operand.hbm [shape: bf16[512,128], index: 3, kind: input, shape index: {}]   ;;  %s1403_s4 = inlined_call_operand.vmem [shape: f32[1,128], index: 4, kind: input, shape index: {}]   ;;  %s1404_s5 = inlined_call_operand.hbm [shape: bf16[128,128], index: 5, kind: input, shape index: {}]   ;;  %s1405_s6 = inlined_call_operand.vmem [shape: f32[1,128], index: 6, kind: input, shape index: {}]   ;;  %s1406_s7 = inlined_call_operand.hbm [shape: bf16[128,128], index: 7, kind: input, shape index: {}]   ;;  %s1407_s8 = inlined_call_operand.vmem [shape: f32[1,128], index: 8, kind: input, shape index: {}]   ;;  %s1408_s9 = inlined_call_operand.hbm [shape: f32[16,128], index: 9, kind: output, shape index: {}]  }
   0x1   :  { %15 = vsyncpa [#allocation6], 0 }
   0x2   :  { %16 = vsyncpa [#allocation9], 0 }
   0x3   :  { %17 = vsyncpa [#allocation12], 0 }
   0x4   :  { %18 = vsyncpa [#allocation4], 0  ;;  %s1273_s30 = smov [#allocation5]  }
   0x5   :  { %s36_s10 = sshll.u32 %s1273_s30, 4  ;;  %s37_s10 = int_to_ptr.vmem [resolvable:$true] %s36_s10 }
   0x6   :  { %s1131_s11 = scalar_lea.vmem %s37_s10, 512  ;;  %p1136_p1 = scmp.lt.s32.totalorder %s37_s10, %s37_s10 }
   0x7   :  { %p1132_p0 = scmp.ne.s32.totalorder %s37_s10, %s1131_s11  ;;  %p1137_p2 = scmp.lt.s32.totalorder %s1131_s11, %s1131_s11 }
   0x9   :  { %p1138_p3 = por %p1137_p2, %p1136_p1 }
   0xb   :  { %p1139_p4 = pnand %p1138_p3, %p1132_p0 }
   0xd   :  { %1142 = shalt.err (!%p1139_p4)
}
   0xe   :  { %s1274_s12 = smov 256   ;;  %s1275_s13 = smov 16  }
   0xf   :  { %42 = dma.hbm_to_vmem [thread:$0]  %s1400_s1, 512, %s37_s10, [#allocation6], %s1274_s12, %s1274_s12, %s1275_s13  }
  0x10   :  { %s1276_s16 = smov [#allocation8]   ;;  %s1277_s18 = smov [#allocation2]  }
  0x11   :  { %s58_s17 = sshll.u32 %s1276_s16, 4  ;;  %s24_s19 = sshll.u32 %s1277_s18, 4  ;;  %s59_s17 = int_to_ptr.vmem [resolvable:$true] %s58_s17  ;;  %s25_s19 = int_to_ptr.vmem [resolvable:$true] %s24_s19 }
  0x12   :  { %s1151_s20 = scalar_lea.vmem %s59_s17, 4096  ;;  %p1156_p6 = scmp.lt.s32.totalorder %s59_s17, %s59_s17 }
  0x13   :  { %p1152_p5 = scmp.ne.s32.totalorder %s59_s17, %s1151_s20  ;;  %p1157_p7 = scmp.lt.s32.totalorder %s1151_s20, %s1151_s20 }
  0x15   :  { %p1158_p8 = por %p1157_p7, %p1156_p6 }
  0x17   :  { %p1159_p9 = pnand %p1158_p8, %p1152_p5 }
  0x19   :  { %1162 = shalt.err (!%p1159_p9)
}
  0x1a   :  { %s1278_s21 = smov 64   ;;  %s1279_s22 = smov 4  }
  0x1b   :  { %64 = dma.hbm_to_vmem [thread:$0]  %s1402_s3, 4096, %s59_s17, [#allocation9], %s1278_s21, %s1278_s21, %s1279_s22  }
  0x1c   :  { %s1171_s1 = scalar_lea.vmem %s25_s19, 128  ;;  %p1176_p11 = scmp.lt.s32.totalorder %s25_s19, %s25_s19 }
  0x1d   :  { %p1172_p10 = scmp.ne.s32.totalorder %s25_s19, %s1171_s1  ;;  %p1177_p12 = scmp.lt.s32.totalorder %s1171_s1, %s1171_s1 }
  0x1f   :  { %p1178_p13 = por %p1177_p12, %p1176_p11 }
  0x21   :  { %p1179_p0 = pnand %p1178_p13, %p1172_p10 }
  0x23   :  { %1182 = shalt.err (!%p1179_p0)
}
  0x24   :  { %30 = dma.hbm_to_vmem [thread:$0]  %s1399_s0, 128, %s25_s19, [#allocation3], %s1278_s21, %s1278_s21, %s1279_s22  }
  0x25   :  { %s1280_s27 = smov [#allocation7]   ;;  %s1281_s29 = smov [#allocation10]  }
  0x26   :  { %s49_s28 = sshll.u32 %s1280_s27, 4  ;;  %s72_s3 = sshll.u32 %s1281_s29, 4  ;;  %s50_s28 = int_to_ptr.vmem [resolvable:$true] %s49_s28  ;;  %s73_s3 = int_to_ptr.vmem [resolvable:$true] %s72_s3 }
  0x27   :  { %s1191_s30 = scalar_lea.vmem %s50_s28, 64  ;;  %p1196_p2 = scmp.lt.s32.totalorder %s50_s28, %s50_s28 }
  0x28   :  { %p1192_p1 = scmp.ne.s32.totalorder %s50_s28, %s1191_s30  ;;  %p1197_p3 = scmp.lt.s32.totalorder %s1191_s30, %s1191_s30 }
  0x2a   :  { %p1198_p4 = por %p1197_p3, %p1196_p2 }
  0x2c   :  { %p1199_p5 = pnand %p1198_p4, %p1192_p1 }
  0x2e   :  { %1202 = shalt.err (!%p1199_p5)
}
  0x2f   :  { %52 = dma.hbm_to_vmem [thread:$0]  %s1401_s2, 64, %s50_s28, [#allocation6]  }
  0x30   :  { %s1211_s12 = scalar_lea.vmem %s73_s3, 1024  ;;  %p1216_p7 = scmp.lt.s32.totalorder %s73_s3, %s73_s3 }
  0x31   :  { %p1212_p6 = scmp.ne.s32.totalorder %s73_s3, %s1211_s12  ;;  %p1217_p8 = scmp.lt.s32.totalorder %s1211_s12, %s1211_s12 }
  0x33   :  { %p1218_p9 = por %p1217_p8, %p1216_p7 }
  0x35   :  { %p1219_p10 = pnand %p1218_p9, %p1212_p6 }
  0x37   :  { %1222 = shalt.err (!%p1219_p10)
}
  0x38   :  { %78 = dma.hbm_to_vmem [thread:$0]  %s1404_s5, 1024, %s73_s3, [#allocation9], %s1278_s21, %s1278_s21, %s1279_s22  }
  0x39   :  { %s1282_s14 = smov [#allocation11]  }
  0x3a   :  { %s86_s15 = sshll.u32 %s1282_s14, 4  ;;  %s87_s15 = int_to_ptr.vmem [resolvable:$true] %s86_s15 }
  0x3b   :  { %s1231_s16 = scalar_lea.vmem %s87_s15, 1024  ;;  %p1236_p12 = scmp.lt.s32.totalorder %s87_s15, %s87_s15 }
  0x3c   :  { %p1232_p11 = scmp.ne.s32.totalorder %s87_s15, %s1231_s16  ;;  %p1237_p13 = scmp.lt.s32.totalorder %s1231_s16, %s1231_s16 }
  0x3e   :  { %p1238_p0 = por %p1237_p13, %p1236_p12 }
  0x40   :  { %p1239_p1 = pnand %p1238_p0, %p1232_p11 }
  0x42   :  { %1242 = shalt.err (!%p1239_p1)
}
  0x43   :  { %92 = dma.hbm_to_vmem [thread:$0]  %s1406_s7, 1024, %s87_s15, [#allocation12], %s1278_s21, %s1278_s21, %s1279_s22  }
  0x44   :  { %1263 = dma.done.wait [#allocation3], 128  }
  0x45   :  { %1264 = vsyncadd [#allocation3], 4294967168 }
  0x46   :  { %1265 = dma.done.wait [#allocation6], 576  }
  0x47   :  { %1266 = vsyncadd [#allocation6], 4294966720 }
  0x48   :  { %1267 = dma.done.wait [#allocation9], 5120  }
  0x49   :  { %1268 = vsyncadd [#allocation9], 4294962176 }
  0x4a   :  { %1269 = dma.done.wait [#allocation12], 1024  }
  0x4b   :  { %1270 = vsyncadd [#allocation12], 4294966272  ;;  %v1283_v0 = vmov 0   ;;  %v1060_v1 = vld [vmem:[#allocation5 + $0x4] ss:$16 sps:$4 sm:$0xff]   ;;  %v1066_v5 = vld [vmem:[#allocation2] sm:$0xff]   ;;  %v122_v39 = vlaneseq }
  0x4c   :  { %203 = vmatprep.mubr.bf16.mxu0 %v1283_v0  ;;  %246 = vmatprep.mubr.bf16.mxu1 %v1283_v0  ;;  %v1062_v2 = vld [vmem:[#allocation5 + $0xc] ss:$16 sps:$4 sm:$0xff]   ;;  %v1064_v3 = vld [vmem:[#allocation5] ss:$16 sps:$4 sm:$0xff]   ;;  %v1065_v4 = vld [vmem:[#allocation5 + $0x8] ss:$16 sps:$4 sm:$0xff]  }
  0x4d   :  { %185 = vmatprep.subr.bf16.mxu0 %v1060_v1  ;;  %228 = vmatprep.subr.bf16.mxu1 %v1062_v2  ;;  %vm167_vm0 = vcmask 130048   ;;  %v1067_v6 = vld [vmem:[#allocation8 + $0x78] sm:$0xff]   ;;  %v1071_v10 = vld [vmem:[#allocation8 + $0x70] sm:$0xff]   ;;  %v1075_v14 = vld [vmem:[#allocation8 + $0x68] sm:$0xff]   ;;  %v1284_v38 = vmov 0.0   ;;  %v123_v40 = vshrl.u32 %v122_v39, 7 }
  0x4e   :  { %186 = vmatpush1.bf16.msra.mxu0 %v1064_v3  ;;  %229 = vmatpush1.bf16.msra.mxu1 %v1065_v4  ;;  %v1068_v7 = vld [vmem:[#allocation8 + $0xf8] sm:$0xff]   ;;  %v1072_v11 = vld [vmem:[#allocation8 + $0xf0] sm:$0xff]   ;;  %v1076_v15 = vld [vmem:[#allocation8 + $0xe8] sm:$0xff]   ;;  %vm1285_vm1 = vmmov 0  }
  0x4f   :  { %942 = vmatprep.subr.bf16.mxu0 %v1067_v6  ;;  %v1069_v8 = vld [vmem:[#allocation8 + $0x38] sm:$0xff]   ;;  %964 = vmatprep.subr.bf16.mxu1 %v1068_v7  ;;  %v1073_v12 = vld [vmem:[#allocation8 + $0x30] sm:$0xff]   ;;  %v1077_v16 = vld [vmem:[#allocation8 + $0x28] sm:$0xff]   ;;  %v128_v41 = vsub.s32 1, %v123_v40  ;;  %v136_v42 = vsub.s32 3, %v123_v40  ;;  %v124_v43 = vsub.s32 0, %v123_v40 }
  0x50   :  { %v1070_v9 = vld [vmem:[#allocation8 + $0xb8] sm:$0xff]   ;;  %v1074_v13 = vld [vmem:[#allocation8 + $0xb0] sm:$0xff]   ;;  %v1078_v17 = vld [vmem:[#allocation8 + $0xa8] sm:$0xff]   ;;  %v132_v44 = vsub.s32 2, %v123_v40 }
  0x51   :  { %889 = vmatmul.mubr.msk.bf16.vlgmr.msra.gmra.mxu0 %vm167_vm0, %v1066_v5  ;;  %890 = vmatmul.mubr.msk.bf16.vlgmr.msra.gmra.mxu1 %vm167_vm0, %v1066_v5  ;;  %v1079_v18 = vld [vmem:[#allocation8 + $0x60] sm:$0xff]   ;;  %v1083_v22 = vld [vmem:[#allocation8 + $0x58] sm:$0xff]   ;;  %v1087_v26 = vld [vmem:[#allocation8 + $0x50] sm:$0xff]  }
  0x52   :  { %943 = vmatpush3.bf16.msra.mxu0 %v1069_v8  ;;  %965 = vmatpush3.bf16.msra.mxu1 %v1070_v9  ;;  %v1080_v19 = vld [vmem:[#allocation8 + $0xe0] sm:$0xff]   ;;  %v1084_v23 = vld [vmem:[#allocation8 + $0xd8] sm:$0xff]   ;;  %v1088_v27 = vld [vmem:[#allocation8 + $0xd0] sm:$0xff]  }
  0x53   :  { %944 = vmatprep.subr.bf16.mxu0 %v1071_v10  ;;  %966 = vmatprep.subr.bf16.mxu1 %v1072_v11  ;;  %v1081_v20 = vld [vmem:[#allocation8 + $0x20] sm:$0xff]   ;;  %v1085_v24 = vld [vmem:[#allocation8 + $0x18] sm:$0xff]   ;;  %v1089_v28 = vld [vmem:[#allocation8 + $0x10] sm:$0xff]  }
  0x54   :  { %v1082_v21 = vld [vmem:[#allocation8 + $0xa0] sm:$0xff]   ;;  %v1086_v25 = vld [vmem:[#allocation8 + $0x98] sm:$0xff]   ;;  %v1090_v29 = vld [vmem:[#allocation8 + $0x90] sm:$0xff]  }
  0x55   :  { %v1091_v30 = vld [vmem:[#allocation8 + $0x48] sm:$0xff]   ;;  %v1095_v34 = vld [vmem:[#allocation8 + $0x40] sm:$0xff]   ;;  %v120_v45 = vld [vmem:[#allocation7] sm:$0xf] }
  0x56   :  { %945 = vmatpush3.bf16.msra.mxu0 %v1073_v12  ;;  %967 = vmatpush3.bf16.msra.mxu1 %v1074_v13  ;;  %v1092_v31 = vld [vmem:[#allocation8 + $0xc8] sm:$0xff]   ;;  %v1096_v35 = vld [vmem:[#allocation8 + $0xc0] sm:$0xff]   ;;  %v129_v48 = vrot.slane %v120_v45, %v128_v41  ;;  %v137_v49 = vrot.slane %v120_v45, %v136_v42  ;;  %v125_v50 = vrot.slane %v120_v45, %v124_v43  ;;  %v1099_v12 = vld [vmem:[#allocation10 + $0x38] sm:$0xff]  }
  0x57   :  { %946 = vmatprep.subr.bf16.mxu0 %v1075_v14  ;;  %968 = vmatprep.subr.bf16.mxu1 %v1076_v15  ;;  %v1093_v32 = vld [vmem:[#allocation8 + $0x8] sm:$0xff]   ;;  %v1097_v36 = vld [vmem:[#allocation8] sm:$0xff]   ;;  %v133_v51 = vrot.slane %v120_v45, %v132_v44  ;;  %v1100_v15 = vld [vmem:[#allocation10 + $0x30] sm:$0xff]  }
  0x58   :  { %v1094_v33 = vld [vmem:[#allocation8 + $0x88] sm:$0xff]   ;;  %v1098_v37 = vld [vmem:[#allocation8 + $0x80] sm:$0xff]  }
  0x5a   :  { %947 = vmatpush3.bf16.msra.mxu0 %v1077_v16  ;;  %969 = vmatpush3.bf16.msra.mxu1 %v1078_v17  ;;  %v1101_v16 = vld [vmem:[#allocation10 + $0x28] sm:$0xff]   ;;  %v1102_v17 = vld [vmem:[#allocation10 + $0x20] sm:$0xff]  }
  0x5b   :  { %948 = vmatprep.subr.bf16.mxu0 %v1079_v18  ;;  %970 = vmatprep.subr.bf16.mxu1 %v1080_v19  ;;  %v1103_v18 = vld [vmem:[#allocation10 + $0x18] sm:$0xff]   ;;  %v1104_v19 = vld [vmem:[#allocation10 + $0x10] sm:$0xff]  }
  0x5e   :  { %949 = vmatpush3.bf16.msra.mxu0 %v1081_v20  ;;  %971 = vmatpush3.bf16.msra.mxu1 %v1082_v21  ;;  %v1105_v20 = vld [vmem:[#allocation10 + $0x8] sm:$0xff]   ;;  %v1106_v21 = vld [vmem:[#allocation10] sm:$0xff]  }
  0x5f   :  { %950 = vmatprep.subr.bf16.mxu0 %v1083_v22  ;;  %972 = vmatprep.subr.bf16.mxu1 %v1084_v23  ;;  %v1107_v22 = vld [vmem:[#allocation11 + $0x38] sm:$0xff]   ;;  %v1108_v23 = vld [vmem:[#allocation11 + $0x30] sm:$0xff]  }
  0x62   :  { %951 = vmatpush3.bf16.msra.mxu0 %v1085_v24  ;;  %973 = vmatpush3.bf16.msra.mxu1 %v1086_v25  ;;  %v1109_v24 = vld [vmem:[#allocation11 + $0x28] sm:$0xff]   ;;  %v1110_v25 = vld [vmem:[#allocation11 + $0x20] sm:$0xff]  }
  0x63   :  { %952 = vmatprep.subr.bf16.mxu0 %v1087_v26  ;;  %974 = vmatprep.subr.bf16.mxu1 %v1088_v27  ;;  %v1111_v26 = vld [vmem:[#allocation11 + $0x18] sm:$0xff]  }
  0x66   :  { %953 = vmatpush3.bf16.msra.mxu0 %v1089_v28  ;;  %975 = vmatpush3.bf16.msra.mxu1 %v1090_v29  ;;  %v891_v29 = vld [vmem:[%s1403_s4] ss:$0 sm:$0xff] }
  0x67   :  { %954 = vmatprep.subr.bf16.mxu0 %v1091_v30  ;;  %976 = vmatprep.subr.bf16.mxu1 %v1092_v31 }
  0x6a   :  { %955 = vmatpush3.bf16.msra.mxu0 %v1093_v32  ;;  %977 = vmatpush3.bf16.msra.mxu1 %v1094_v33 }
  0x6b   :  { %956 = vmatprep.subr.bf16.mxu0 %v1095_v34  ;;  %978 = vmatprep.subr.bf16.mxu1 %v1096_v35 }
  0x6e   :  { %957 = vmatpush3.bf16.msra.mxu0 %v1097_v36  ;;  %979 = vmatpush3.bf16.msra.mxu1 %v1098_v37 }
  0x6f   :  { %1004 = vmatprep.subr.bf16.mxu0 %v1284_v38  ;;  %1024 = vmatprep.subr.bf16.mxu1 %v1284_v38 }
 0x111   :  { %v205_v46 = vpop.f32.mrf.mxu0  ;;  %v248_v47 = vpop.f32.mrf.mxu1 }
 0x112   :  { %v206_v60 = vadd.f32 %v205_v46, %v125_v50  ;;  %v249_v61 = vadd.f32 %v248_v47, %v133_v51 }
 0x113   :  { %v207_v52 = vpop.f32.mrf.mxu0  ;;  %v250_v53 = vpop.f32.mrf.mxu1 }
 0x114   :  { %v208_v56 = vadd.f32 %v207_v52, %v129_v48  ;;  %v251_v57 = vadd.f32 %v250_v53, %v137_v49  ;;  %v257_v8 = vmax.f32 %v206_v60, 0.0  ;;  %v259_v9 = vmax.f32 %v249_v61, 0.0 }
 0x115   :  { %v209_v54 = vpop.f32.mrf.mxu0  ;;  %v252_v55 = vpop.f32.mrf.mxu1 }
 0x116   :  { %v210_v58 = vadd.f32 %v209_v54, %v125_v50  ;;  %v253_v59 = vadd.f32 %v252_v55, %v133_v51  ;;  %v258_v4 = vmax.f32 %v208_v56, 0.0  ;;  %v260_v5 = vmax.f32 %v251_v57, 0.0  ;;  %v1114_v50 = vld [vmem:[#allocation11] sm:$0xff]   ;;  %v924_v51 = vld [vmem:[%s1405_s6] ss:$0 sm:$0xff]  ;;  %s1286_s6 = smov [#allocation13]  }
 0x117   :  { %v211_v62 = vpop.f32.mrf.mxu0  ;;  %v254_v63 = vpop.f32.mrf.mxu1 }
 0x118   :  { %v212_v0 = vadd.f32 %v211_v62, %v129_v48  ;;  %v255_v1 = vadd.f32 %v254_v63, %v137_v49  ;;  %v261_v2 = vmax.f32 %v210_v58, 0.0  ;;  %v263_v3 = vmax.f32 %v253_v59, 0.0  ;;  %v1112_v48 = vld [vmem:[#allocation11 + $0x10] sm:$0xff]   ;;  %v1113_v49 = vld [vmem:[#allocation11 + $0x8] sm:$0xff]  }
 0x11a   :  { %v262_v6 = vmax.f32 %v212_v0, 0.0  ;;  %v264_v7 = vmax.f32 %v255_v1, 0.0  ;;  %v265_v13 = vpack.c.bf16 %v261_v2, %v257_v8  ;;  %v267_v14 = vpack.c.bf16 %v263_v3, %v259_v9 }
 0x11c   :  { %v266_v10 = vpack.c.bf16 %v262_v6, %v258_v4  ;;  %v268_v11 = vpack.c.bf16 %v264_v7, %v260_v5 }
 0x11e   :  { %564 = vmatprep.mubr.bf16.mxu0 %v266_v10  ;;  %605 = vmatprep.mubr.bf16.mxu1 %v268_v11 }
 0x11f   :  { %565 = vmatmul.mubr.bf16.vlgmr.msra.gmra.mxu0 %v265_v13  ;;  %606 = vmatmul.mubr.bf16.vlgmr.msra.gmra.mxu1 %v267_v14 }
 0x120   :  { %1005 = vmatpush3.bf16.msra.mxu0 %v1099_v12  ;;  %1020 = vmatprep.mubr.msk.bf16.mxu0 %vm1285_vm1, %v1284_v38 }
 0x121   :  { %1006 = vmatprep.subr.bf16.mxu0 %v1284_v38  ;;  %1040 = vmatprep.mubr.msk.bf16.mxu1 %vm1285_vm1, %v1284_v38 }
 0x122   :  { %1025 = vmatpush3.bf16.msra.mxu1 %v1107_v22 }
 0x123   :  { %1026 = vmatprep.subr.bf16.mxu1 %v1284_v38 }
 0x124   :  { %1007 = vmatpush3.bf16.msra.mxu0 %v1100_v15 }
 0x125   :  { %1008 = vmatprep.subr.bf16.mxu0 %v1284_v38 }
 0x126   :  { %1027 = vmatpush3.bf16.msra.mxu1 %v1108_v23 }
 0x127   :  { %1028 = vmatprep.subr.bf16.mxu1 %v1284_v38 }
 0x128   :  { %1009 = vmatpush3.bf16.msra.mxu0 %v1101_v16 }
 0x129   :  { %1010 = vmatprep.subr.bf16.mxu0 %v1284_v38 }
 0x12a   :  { %1029 = vmatpush3.bf16.msra.mxu1 %v1109_v24 }
 0x12b   :  { %1030 = vmatprep.subr.bf16.mxu1 %v1284_v38 }
 0x12c   :  { %1011 = vmatpush3.bf16.msra.mxu0 %v1102_v17 }
 0x12d   :  { %1012 = vmatprep.subr.bf16.mxu0 %v1284_v38 }
 0x12e   :  { %1031 = vmatpush3.bf16.msra.mxu1 %v1110_v25 }
 0x12f   :  { %1032 = vmatprep.subr.bf16.mxu1 %v1284_v38 }
 0x130   :  { %1013 = vmatpush3.bf16.msra.mxu0 %v1103_v18 }
 0x131   :  { %1014 = vmatprep.subr.bf16.mxu0 %v1284_v38 }
 0x132   :  { %1033 = vmatpush3.bf16.msra.mxu1 %v1111_v26 }
 0x133   :  { %1034 = vmatprep.subr.bf16.mxu1 %v1284_v38 }
 0x134   :  { %1015 = vmatpush3.bf16.msra.mxu0 %v1104_v19 }
 0x135   :  { %1016 = vmatprep.subr.bf16.mxu0 %v1284_v38 }
 0x136   :  { %1035 = vmatpush3.bf16.msra.mxu1 %v1112_v48 }
 0x137   :  { %1036 = vmatprep.subr.bf16.mxu1 %v1284_v38 }
 0x138   :  { %1017 = vmatpush3.bf16.msra.mxu0 %v1105_v20 }
 0x139   :  { %1018 = vmatprep.subr.bf16.mxu0 %v1284_v38 }
 0x13a   :  { %1037 = vmatpush3.bf16.msra.mxu1 %v1113_v49 }
 0x13b   :  { %1038 = vmatprep.subr.bf16.mxu1 %v1284_v38  ;;  %v933_v38 = vld [vmem:[%s1407_s8] ss:$0 sm:$0xff]  ;;  %s869_s8 = sshll.u32 %s1286_s6, 4  ;;  %s870_s8 = int_to_ptr.vmem [resolvable:$true] %s869_s8 }
 0x13c   :  { %1019 = vmatpush3.bf16.msra.mxu0 %v1106_v21  ;;  %s1243_s21 = scalar_lea.vmem %s870_s8, 256  ;;  %p1248_p3 = scmp.lt.s32.totalorder %s870_s8, %s870_s8 }
 0x13d   :  { %p1244_p2 = scmp.ne.s32.totalorder %s870_s8, %s1243_s21  ;;  %p1249_p4 = scmp.lt.s32.totalorder %s1243_s21, %s1243_s21 }
 0x13e   :  { %1039 = vmatpush3.bf16.msra.mxu1 %v1114_v50 }
 0x13f   :  { %p1250_p5 = por %p1249_p4, %p1248_p3 }
 0x141   :  { %p1251_p6 = pnand %p1250_p5, %p1244_p2 }
 0x1df   :  { %v958_v27 = vpop.f32.mrf.mxu0  ;;  %v980_v28 = vpop.f32.mrf.mxu1 }
 0x1e1   :  { %v959_v30 = vpop.f32.mrf.mxu0  ;;  %v981_v31 = vpop.f32.mrf.mxu1 }
 0x1e2   :  { %v960_v32 = vadd.f32 %v959_v30, %v958_v27  ;;  %v982_v39 = vadd.f32 %v981_v31, %v980_v28 }
 0x1e3   :  { %v961_v33 = vpop.f32.mrf.mxu0  ;;  %v983_v34 = vpop.f32.mrf.mxu1 }
 0x1e4   :  { %v567_v35 = vadd.f32 %v960_v32, %v891_v29 }
 0x1e5   :  { %v962_v36 = vpop.f32.mrf.mxu0  ;;  %v984_v37 = vpop.f32.mrf.mxu1 }
 0x1e6   :  { %v963_v40 = vadd.f32 %v962_v36, %v961_v33  ;;  %v608_v41 = vadd.f32 %v982_v39, %v567_v35  ;;  %v985_v43 = vadd.f32 %v984_v37, %v983_v34 }
 0x1e8   :  { %v570_v42 = vadd.f32 %v963_v40, %v891_v29  ;;  %v614_v45 = vmax.f32 %v608_v41, 0.0 }
 0x1ea   :  { %v611_v44 = vadd.f32 %v985_v43, %v570_v42 }
 0x1ec   :  { %v615_v46 = vmax.f32 %v611_v44, 0.0 }
 0x1ee   :  { %v616_v47 = vpack.c.bf16 %v615_v46, %v614_v45 }
 0x1f0   :  { %1021 = vmatmul.mubr.bf16.vlgmr.msra.gmra.mxu0 %v616_v47 }
 0x2b0   :  { %v722_v52 = vpop.f32.mrf.mxu0 }
 0x2b1   :  { %v723_v54 = vadd.f32 %v924_v51, %v722_v52 }
 0x2b2   :  { %v1022_v53 = vpop.f32.mrf.mxu0 }
 0x2b3   :  { %v729_v58 = vmax.f32 %v723_v54, 0.0 }
 0x2b4   :  { %v725_v55 = vpop.f32.mrf.mxu0 }
 0x2b5   :  { %v726_v56 = vadd.f32 %v924_v51, %v725_v55 }
 0x2b6   :  { %v1023_v57 = vpop.f32.mrf.mxu0 }
 0x2b7   :  { %v730_v59 = vmax.f32 %v726_v56, 0.0 }
 0x2b9   :  { %v731_v60 = vpack.c.bf16 %v730_v59, %v729_v58 }
 0x2bb   :  { %1041 = vmatmul.mubr.bf16.vlgmr.msra.gmra.mxu1 %v731_v60 }
 0x37b   :  { %v837_v61 = vpop.f32.mrf.mxu1 }
 0x37c   :  { %v838_v62 = vadd.f32 %v933_v38, %v837_v61 }
 0x37d   :  { %v1042_v63 = vpop.f32.mrf.mxu1 }
 0x37e   :  { %844 = vmax.xlane.f32.xlu0 %v838_v62 }
 0x37f   :  { %v840_v0 = vpop.f32.mrf.mxu1 }
 0x380   :  { %v841_v1 = vadd.f32 %v933_v38, %v840_v0 }
 0x381   :  { %v1043_v2 = vpop.f32.mrf.mxu1 }
 0x382   :  { %846 = vmax.xlane.f32.xlu0 %v841_v1 }
 0x407   :  { %v845_v3 = vpop.xlane.xlu0 %844 }
 0x408   :  { %v848_v4 = vsub.f32 %v838_v62, %v845_v3 }
 0x40a   :  { %v850_v5 = vmul.f32 1.442695, %v848_v4 }
 0x40b   :  { %v847_v6 = vpop.xlane.xlu0 %846 }
 0x40c   :  { %1115 = vpow2.f32 %v850_v5  ;;  %v849_v7 = vsub.f32 %v841_v1, %v847_v6 }
 0x40e   :  { %v852_v8 = vmul.f32 1.442695, %v849_v7 }
 0x410   :  { %1117 = vpow2.f32 %v852_v8 }
 0x419   :  { %v1116_v9 = vpop.eup %1115 }
 0x41a   :  { %854 = vadd.xlane.f32.xlu1 %v1116_v9 }
 0x41d   :  { %v1118_v10 = vpop.eup %1117 }
 0x41e   :  { %856 = vadd.xlane.f32.xlu1 %v1118_v10 }
 0x4a3   :  { %v855_v11 = vpop.xlane.xlu1 %854 }
 0x4a4   :  { %1119 = vrcp.f32 %v855_v11 }
 0x4a7   :  { %v857_v12 = vpop.xlane.xlu1 %856 }
 0x4a8   :  { %1121 = vrcp.f32 %v857_v12 }
 0x4b1   :  { %v1120_v13 = vpop.eup %1119 }
 0x4b2   :  { %v859_v14 = vmul.f32 %v1120_v13, %v1116_v9 }
 0x4b4   :  { %862 = vst [vmem:[#allocation13] sm:$0xff] %v859_v14 }
 0x4b5   :  { %v1122_v15 = vpop.eup %1121 }
 0x4b6   :  { %v861_v16 = vmul.f32 %v1122_v15, %v1118_v10 }
 0x4b8   :  { %863 = vst [vmem:[#allocation13 + $0x8] sm:$0xff] %v861_v16 }
 0x4b9   :  { %1254 = shalt.err (!%p1251_p6)
}
 0x4ba   :  { %s1287_s22 = smov 128   ;;  %s1288_s23 = smov 8  }
 0x4bb   :  { %875 = dma.vmem_to_hbm [thread:$0]  %s870_s8, 256, %s1408_s9, [#allocation4], %s1287_s22, %s1287_s22, %s1288_s23  }
 0x4bc   :  { %1271 = dma.done.wait [#allocation4], 256  }
 0x4bd   :  { %1272 = vsyncadd [#allocation4], 4294967040 }
 0x4be   :  { %879 = vsyncpa [#allocation3], 1 }
 0x4bf   :  { %880 = vsyncpa [#allocation6], 1 }
 0x4c0   :  { %881 = vsyncpa [#allocation9], 1 }
 0x4c1   :  { %882 = vsyncpa [#allocation12], 1 }
 0x4c2   :  { %883 = vsyncpa [#allocation4], 1 }

</bundles_post_ra>
